<compile_context>
chip_gen: v6e
topology: v6e:2x2x1
jax: 0.10.0
libtpu: 0.0.40
codegen_flags: <defaults>
</compile_context>

<pallas_src>
import jax
import jax.numpy as jnp
from jax.experimental import pallas as pl
from jax.experimental.pallas import tpu as pltpu

HIDDEN = 64
NUM_HEADS = 4
HEAD_DIM = HIDDEN // NUM_HEADS
FFN = HIDDEN * 4
LN_EPS = 1e-5


def _layer_norm(x, w, b):
    mean = jnp.mean(x, axis=-1, keepdims=True)
    var = jnp.mean((x - mean) ** 2, axis=-1, keepdims=True)
    return (x - mean) * jax.lax.rsqrt(var + LN_EPS) * w + b


def transformer_layer_kernel(
    x_ref,
    win_ref, bin_ref,          # in_proj, pre-transposed: (D, 3D), (1, 3D)
    wout_ref, bout_ref,        # out_proj, pre-transposed: (D, D), (1, D)
    ln1_w_ref, ln1_b_ref,
    w1_ref, b1_ref,            # linear1, pre-transposed: (D, 4D), (1, 4D)
    w2_ref, b2_ref,            # linear2, pre-transposed: (4D, D), (1, D)
    ln2_w_ref, ln2_b_ref,
    o_ref,
):
    Bt, S, D = x_ref.shape

    # Fold the batch block into the matmul M dimension.
    x = x_ref[...].reshape(Bt * S, D)                       # (N, D), N = Bt*S

    # ---- QKV projection: one (N, D) x (D, 3D) MXU matmul ----
    # (q columns of win/bin already carry the 1/sqrt(head_dim) scale)
    qkv = jnp.dot(x, win_ref[...], preferred_element_type=jnp.float32) + bin_ref[...]
    qkv = qkv.reshape(Bt, S, 3 * D)

    # ---- multi-head self-attention, batched over Bt via leading-batch einsum ----
    # TODO(synk): additive attention mask (src_mask) not wired in; mask=None path only.
    head_outs = []
    for h in range(NUM_HEADS):                              # static unroll, 4 heads
        lo = h * HEAD_DIM
        qh = qkv[:, :, lo:lo + HEAD_DIM]                    # (Bt, S, Hd)
        kh = qkv[:, :, D + lo:D + lo + HEAD_DIM]            # (Bt, S, Hd)
        vh = qkv[:, :, 2 * D + lo:2 * D + lo + HEAD_DIM]    # (Bt, S, Hd)

        s = jnp.einsum("bqd,bkd->bqk", qh, kh,
                       preferred_element_type=jnp.float32)  # (Bt, S, S)
        s = s - jnp.max(s, axis=-1, keepdims=True)
        p = jnp.exp(s)
        denom = jnp.sum(p, axis=-1, keepdims=True)
        p = p * pl.reciprocal(denom, approx=True)           # EUP, ~free
        head_outs.append(jnp.einsum("bqk,bkd->bqd", p, vh,
                                    preferred_element_type=jnp.float32))
    attn = jnp.concatenate(head_outs, axis=-1).reshape(Bt * S, D)

    # output projection
    attn = jnp.dot(attn, wout_ref[...],
                   preferred_element_type=jnp.float32) + bout_ref[...]

    # residual + LayerNorm 1  (dropout1 == identity in eval mode)
    x1 = _layer_norm(x + attn, ln1_w_ref[...], ln1_b_ref[...])

    # ---- feed-forward ----
    h1 = jnp.dot(x1, w1_ref[...], preferred_element_type=jnp.float32) + b1_ref[...]
    h1 = jnp.maximum(h1, 0.0)                               # ReLU
    ff = jnp.dot(h1, w2_ref[...], preferred_element_type=jnp.float32) + b2_ref[...]

    # residual + LayerNorm 2  (dropout2 == identity in eval mode)
    x2 = _layer_norm(x1 + ff, ln2_w_ref[...], ln2_b_ref[...])

    # One lane-contiguous slab store per step. (Last dim is 64 < 128 lanes; a
    # wrapper-side (B, S*D) view would make it fully lane-dense if ever needed.)
    o_ref[...] = x2.reshape(Bt, S, D)


PREPPED_ORDER = (
    "win_t", "bin",
    "wout_t", "bout",
    "ln1_w", "ln1_b",
    "w1_t", "b1",
    "w2_t", "b2",
    "ln2_w", "ln2_b",
)


def prepare_params(params):
    """Pre-transpose weights (and fold the q scale into in_proj) in plain XLA,
    so the kernel never runs an XLU transpose or an extra scale multiply."""
    scale = 1.0 / (HEAD_DIM ** 0.5)
    col_scale = jnp.concatenate([
        jnp.full((HIDDEN,), scale, jnp.float32),
        jnp.ones((2 * HIDDEN,), jnp.float32),
    ])
    win_t = params["in_proj_w"].T * col_scale[None, :]              # (D, 3D)
    bin_ = params["in_proj_b"].reshape(1, 3 * HIDDEN) * col_scale[None, :]
    return {
        "win_t": win_t,
        "bin": bin_,
        "wout_t": params["out_proj_w"].T,                           # (D, D)
        "bout": params["out_proj_b"].reshape(1, HIDDEN),
        "ln1_w": params["ln1_w"].reshape(1, HIDDEN),
        "ln1_b": params["ln1_b"].reshape(1, HIDDEN),
        "w1_t": params["lin1_w"].T,                                 # (D, 4D)
        "b1": params["lin1_b"].reshape(1, FFN),
        "w2_t": params["lin2_w"].T,                                 # (4D, D)
        "b2": params["lin2_b"].reshape(1, HIDDEN),
        "ln2_w": params["ln2_w"].reshape(1, HIDDEN),
        "ln2_b": params["ln2_b"].reshape(1, HIDDEN),
    }


def _pick_block_batch(B, S, target_rows=256):
    """Largest divisor of B with block_batch*S <= target_rows (MXU-sized M tile;
    ~256 rows for v6e/v7x, still fine on v5e)."""
    bt_max = max(1, target_rows // max(S, 1))
    for bt in range(min(B, bt_max), 0, -1):
        if B % bt == 0:
            return bt
    return 1


def simple_transformer_layer(x, params, mask=None, block_batch=None):
    assert mask is None, "mask=None path only"
    B, S, D = x.shape
    assert D == HIDDEN

    prepped = prepare_params(params)
    weights = [prepped[name] for name in PREPPED_ORDER]

    bt = _pick_block_batch(B, S) if block_batch is None else block_batch
    assert B % bt == 0, "block_batch must divide batch"

    def full_spec(w):
        return pl.BlockSpec(w.shape, lambda b, _n=w.ndim: (0,) * _n)

    in_specs = [pl.BlockSpec((bt, S, D), lambda b: (b, 0, 0))] + \
               [full_spec(w) for w in weights]
    out_spec = pl.BlockSpec((bt, S, D), lambda b: (b, 0, 0))

    return pl.pallas_call(
        transformer_layer_kernel,
        out_shape=jax.ShapeDtypeStruct((B, S, D), jnp.float32),
        grid_spec=pltpu.PrefetchScalarGridSpec(
            num_scalar_prefetch=0,
            grid=(B // bt,),
            in_specs=in_specs,
            out_specs=out_spec,
        ),
        compiler_params=pltpu.CompilerParams(dimension_semantics=("parallel",)),
    )(x, *weights)


def init_params(key):
    ks = jax.random.split(key, 8)
    scale = 0.02
    params = {
        # nn.MultiheadAttention packed in_proj: (3*D, D) weight, (3*D,) bias
        "in_proj_w": scale * jax.random.normal(ks[0], (3 * HIDDEN, HIDDEN), jnp.float32),
        "in_proj_b": scale * jax.random.normal(ks[1], (1, 3 * HIDDEN), jnp.float32),
        # out_proj: (D, D), (D,)
        "out_proj_w": scale * jax.random.normal(ks[2], (HIDDEN, HIDDEN), jnp.float32),
        "out_proj_b": scale * jax.random.normal(ks[3], (1, HIDDEN), jnp.float32),
        # LayerNorm1
        "ln1_w": jnp.ones((1, HIDDEN), jnp.float32),
        "ln1_b": jnp.zeros((1, HIDDEN), jnp.float32),
        # linear1: (4D, D), linear2: (D, 4D)
        "lin1_w": scale * jax.random.normal(ks[4], (FFN, HIDDEN), jnp.float32),
        "lin1_b": scale * jax.random.normal(ks[5], (1, FFN), jnp.float32),
        "lin2_w": scale * jax.random.normal(ks[6], (HIDDEN, FFN), jnp.float32),
        "lin2_b": scale * jax.random.normal(ks[7], (1, HIDDEN), jnp.float32),
        # LayerNorm2
        "ln2_w": jnp.ones((1, HIDDEN), jnp.float32),
        "ln2_b": jnp.zeros((1, HIDDEN), jnp.float32),
    }
    return params


def reference_forward(x, p):
    """Pure-JAX reference mirroring nn.TransformerEncoderLayer (post-norm, eval)."""
    def ln(y, w, b):
        m = y.mean(-1, keepdims=True)
        v = ((y - m) ** 2).mean(-1, keepdims=True)
        return (y - m) / jnp.sqrt(v + LN_EPS) * w + b

    B, S, D = x.shape
    qkv = x @ p["in_proj_w"].T + p["in_proj_b"]
    q, k, v = jnp.split(qkv, 3, axis=-1)

    def heads(t):
        return t.reshape(B, S, NUM_HEADS, HEAD_DIM).transpose(0, 2, 1, 3)

    qh, kh, vh = heads(q), heads(k), heads(v)
    scores = jnp.einsum("bhqd,bhkd->bhqk", qh, kh) / (HEAD_DIM ** 0.5)
    probs = jax.nn.softmax(scores, axis=-1)
    attn = jnp.einsum("bhqk,bhkd->bhqd", probs, vh)
    attn = attn.transpose(0, 2, 1, 3).reshape(B, S, D)
    attn = attn @ p["out_proj_w"].T + p["out_proj_b"]
    x1 = ln(x + attn, p["ln1_w"], p["ln1_b"])
    h = jnp.maximum(x1 @ p["lin1_w"].T + p["lin1_b"], 0.0)
    ff = h @ p["lin2_w"].T + p["lin2_b"]
    return ln(x1 + ff, p["ln2_w"], p["ln2_b"])


if __name__ == "__main__":
    key = jax.random.PRNGKey(0)
    k_x, k_p = jax.random.split(key)

    B, S = 2, 8
    x = jax.random.normal(k_x, (B, S, HIDDEN), jnp.float32)
    params = init_params(k_p)

    out = simple_transformer_layer(x, params)
    out = jax.block_until_ready(out)

    ref = reference_forward(x, params)
    assert out.shape == (B, S, HIDDEN)
    # tolerance relaxed slightly because the softmax denominator uses the
    # approximate EUP reciprocal (pl.reciprocal(approx=True)).
    assert jnp.allclose(out, ref, atol=1e-3, rtol=1e-3), "mismatch vs pure-JAX reference"

    print("KERNEL_OK")
</pallas_src>

<mosaic_0001>
module attributes {stable_mosaic.version = 11 : i64} {
  func.func @transformer_layer_kernel(%arg0: i32, %arg1: memref<2x8x64xf32, #tpu.memory_space<vmem>>, %arg2: memref<64x192xf32, #tpu.memory_space<vmem>>, %arg3: memref<1x192xf32, #tpu.memory_space<vmem>>, %arg4: memref<64x64xf32, #tpu.memory_space<vmem>>, %arg5: memref<1x64xf32, #tpu.memory_space<vmem>>, %arg6: memref<1x64xf32, #tpu.memory_space<vmem>>, %arg7: memref<1x64xf32, #tpu.memory_space<vmem>>, %arg8: memref<64x256xf32, #tpu.memory_space<vmem>>, %arg9: memref<1x256xf32, #tpu.memory_space<vmem>>, %arg10: memref<256x64xf32, #tpu.memory_space<vmem>>, %arg11: memref<1x64xf32, #tpu.memory_space<vmem>>, %arg12: memref<1x64xf32, #tpu.memory_space<vmem>>, %arg13: memref<1x64xf32, #tpu.memory_space<vmem>>, %arg14: memref<2x8x64xf32, #tpu.memory_space<vmem>>) attributes {dimension_semantics = [#tpu.dimension_semantics<parallel>], iteration_bounds = array<i64: 1>, scalar_prefetch = 0 : i64, scratch_operands = 0 : i64, tpu.core_type = #tpu.core_type<tc>, window_params = [{transform_indices = @transform_0, window_bounds = array<i64: 2, 8, 64>}, {pipeline_mode = #tpu.pipeline_mode<synchronous>, transform_indices = @transform_1, window_bounds = array<i64: 64, 192>}, {pipeline_mode = #tpu.pipeline_mode<synchronous>, transform_indices = @transform_2, window_bounds = array<i64: 1, 192>}, {pipeline_mode = #tpu.pipeline_mode<synchronous>, transform_indices = @transform_3, window_bounds = array<i64: 64, 64>}, {pipeline_mode = #tpu.pipeline_mode<synchronous>, transform_indices = @transform_4, window_bounds = array<i64: 1, 64>}, {pipeline_mode = #tpu.pipeline_mode<synchronous>, transform_indices = @transform_5, window_bounds = array<i64: 1, 64>}, {pipeline_mode = #tpu.pipeline_mode<synchronous>, transform_indices = @transform_6, window_bounds = array<i64: 1, 64>}, {pipeline_mode = #tpu.pipeline_mode<synchronous>, transform_indices = @transform_7, window_bounds = array<i64: 64, 256>}, {pipeline_mode = #tpu.pipeline_mode<synchronous>, transform_indices = @transform_8, window_bounds = array<i64: 1, 256>}, {pipeline_mode = #tpu.pipeline_mode<synchronous>, transform_indices = @transform_9, window_bounds = array<i64: 256, 64>}, {pipeline_mode = #tpu.pipeline_mode<synchronous>, transform_indices = @transform_10, window_bounds = array<i64: 1, 64>}, {pipeline_mode = #tpu.pipeline_mode<synchronous>, transform_indices = @transform_11, window_bounds = array<i64: 1, 64>}, {pipeline_mode = #tpu.pipeline_mode<synchronous>, transform_indices = @transform_12, window_bounds = array<i64: 1, 64>}, {transform_indices = @transform_13, window_bounds = array<i64: 2, 8, 64>}]} {
    %c0 = arith.constant 0 : index
    %c0_0 = arith.constant 0 : index
    %c0_1 = arith.constant 0 : index
    %0 = vector.load %arg1[%c0, %c0_0, %c0_1] : memref<2x8x64xf32, #tpu.memory_space<vmem>>, vector<2x8x64xf32>
    %1 = vector.shape_cast %0 : vector<2x8x64xf32> to vector<16x64xf32>
    %c0_2 = arith.constant 0 : index
    %c0_3 = arith.constant 0 : index
    %2 = vector.load %arg2[%c0_2, %c0_3] : memref<64x192xf32, #tpu.memory_space<vmem>>, vector<64x192xf32>
    %cst = arith.constant dense<0.000000e+00> : vector<16x192xf32>
    %3 = tpu.matmul %1, %2, %cst {dimension_numbers = #tpu.dot_dimension_numbers<[1], [0], [0], [1], [0, 0, 1, 1], [], []>} : vector<16x64xf32>, vector<64x192xf32>, vector<16x192xf32> -> vector<16x192xf32>
    %c0_4 = arith.constant 0 : index
    %c0_5 = arith.constant 0 : index
    %4 = vector.load %arg3[%c0_4, %c0_5] : memref<1x192xf32, #tpu.memory_space<vmem>>, vector<1x192xf32>
    %5 = vector.broadcast %4 : vector<1x192xf32> to vector<16x192xf32>
    %6 = arith.addf %3, %5 : vector<16x192xf32>
    %7 = vector.shape_cast %6 : vector<16x192xf32> to vector<2x8x192xf32>
    %8 = vector.extract_strided_slice %7 {offsets = [0, 0, 0], sizes = [2, 8, 16], strides = [1, 1, 1]} : vector<2x8x192xf32> to vector<2x8x16xf32>
    %9 = vector.extract_strided_slice %7 {offsets = [0, 0, 64], sizes = [2, 8, 16], strides = [1, 1, 1]} : vector<2x8x192xf32> to vector<2x8x16xf32>
    %10 = vector.extract_strided_slice %7 {offsets = [0, 0, 128], sizes = [2, 8, 16], strides = [1, 1, 1]} : vector<2x8x192xf32> to vector<2x8x16xf32>
    "tpu.trace_start"() <{level = 10 : i32, message = "bqd,bkd->bqk"}> : () -> ()
    %cst_6 = arith.constant dense<0.000000e+00> : vector<2x8x8xf32>
    %11 = tpu.matmul %8, %9, %cst_6 {dimension_numbers = #tpu.dot_dimension_numbers<[2], [2], [1], [1], [0, 0, 0, 1, 1, 1], [0], [0]>} : vector<2x8x16xf32>, vector<2x8x16xf32>, vector<2x8x8xf32> -> vector<2x8x8xf32>
    "tpu.trace_stop"() : () -> ()
    %cst_7 = arith.constant dense<0xFF800000> : vector<2x8xf32>
    %12 = vector.multi_reduction <maximumf>, %11, %cst_7 [2] : vector<2x8x8xf32> to vector<2x8xf32>
    %13 = vector.shape_cast %12 : vector<2x8xf32> to vector<2x8x1xf32>
    %14 = vector.broadcast %13 : vector<2x8x1xf32> to vector<2x8x8xf32>
    %15 = arith.subf %11, %14 : vector<2x8x8xf32>
    %16 = math.exp %15 : vector<2x8x8xf32>
    %cst_8 = arith.constant dense<0.000000e+00> : vector<2x8xf32>
    %17 = vector.multi_reduction <add>, %16, %cst_8 [2] : vector<2x8x8xf32> to vector<2x8xf32>
    %18 = vector.shape_cast %17 : vector<2x8xf32> to vector<2x8x1xf32>
    %19 = tpu.reciprocal %18 {approx = true} : vector<2x8x1xf32> -> vector<2x8x1xf32>
    %20 = vector.broadcast %19 : vector<2x8x1xf32> to vector<2x8x8xf32>
    %21 = arith.mulf %16, %20 : vector<2x8x8xf32>
    "tpu.trace_start"() <{level = 10 : i32, message = "bqk,bkd->bqd"}> : () -> ()
    %cst_9 = arith.constant dense<0.000000e+00> : vector<2x8x16xf32>
    %22 = tpu.matmul %21, %10, %cst_9 {dimension_numbers = #tpu.dot_dimension_numbers<[2], [1], [1], [2], [0, 0, 0, 1, 1, 2], [0], [0]>} : vector<2x8x8xf32>, vector<2x8x16xf32>, vector<2x8x16xf32> -> vector<2x8x16xf32>
    "tpu.trace_stop"() : () -> ()
    %23 = vector.extract_strided_slice %7 {offsets = [0, 0, 16], sizes = [2, 8, 16], strides = [1, 1, 1]} : vector<2x8x192xf32> to vector<2x8x16xf32>
    %24 = vector.extract_strided_slice %7 {offsets = [0, 0, 80], sizes = [2, 8, 16], strides = [1, 1, 1]} : vector<2x8x192xf32> to vector<2x8x16xf32>
    %25 = vector.extract_strided_slice %7 {offsets = [0, 0, 144], sizes = [2, 8, 16], strides = [1, 1, 1]} : vector<2x8x192xf32> to vector<2x8x16xf32>
    "tpu.trace_start"() <{level = 10 : i32, message = "bqd,bkd->bqk"}> : () -> ()
    %cst_10 = arith.constant dense<0.000000e+00> : vector<2x8x8xf32>
    %26 = tpu.matmul %23, %24, %cst_10 {dimension_numbers = #tpu.dot_dimension_numbers<[2], [2], [1], [1], [0, 0, 0, 1, 1, 1], [0], [0]>} : vector<2x8x16xf32>, vector<2x8x16xf32>, vector<2x8x8xf32> -> vector<2x8x8xf32>
    "tpu.trace_stop"() : () -> ()
    %cst_11 = arith.constant dense<0xFF800000> : vector<2x8xf32>
    %27 = vector.multi_reduction <maximumf>, %26, %cst_11 [2] : vector<2x8x8xf32> to vector<2x8xf32>
    %28 = vector.shape_cast %27 : vector<2x8xf32> to vector<2x8x1xf32>
    %29 = vector.broadcast %28 : vector<2x8x1xf32> to vector<2x8x8xf32>
    %30 = arith.subf %26, %29 : vector<2x8x8xf32>
    %31 = math.exp %30 : vector<2x8x8xf32>
    %cst_12 = arith.constant dense<0.000000e+00> : vector<2x8xf32>
    %32 = vector.multi_reduction <add>, %31, %cst_12 [2] : vector<2x8x8xf32> to vector<2x8xf32>
    %33 = vector.shape_cast %32 : vector<2x8xf32> to vector<2x8x1xf32>
    %34 = tpu.reciprocal %33 {approx = true} : vector<2x8x1xf32> -> vector<2x8x1xf32>
    %35 = vector.broadcast %34 : vector<2x8x1xf32> to vector<2x8x8xf32>
    %36 = arith.mulf %31, %35 : vector<2x8x8xf32>
    "tpu.trace_start"() <{level = 10 : i32, message = "bqk,bkd->bqd"}> : () -> ()
    %cst_13 = arith.constant dense<0.000000e+00> : vector<2x8x16xf32>
    %37 = tpu.matmul %36, %25, %cst_13 {dimension_numbers = #tpu.dot_dimension_numbers<[2], [1], [1], [2], [0, 0, 0, 1, 1, 2], [0], [0]>} : vector<2x8x8xf32>, vector<2x8x16xf32>, vector<2x8x16xf32> -> vector<2x8x16xf32>
    "tpu.trace_stop"() : () -> ()
    %38 = vector.extract_strided_slice %7 {offsets = [0, 0, 32], sizes = [2, 8, 16], strides = [1, 1, 1]} : vector<2x8x192xf32> to vector<2x8x16xf32>
    %39 = vector.extract_strided_slice %7 {offsets = [0, 0, 96], sizes = [2, 8, 16], strides = [1, 1, 1]} : vector<2x8x192xf32> to vector<2x8x16xf32>
    %40 = vector.extract_strided_slice %7 {offsets = [0, 0, 160], sizes = [2, 8, 16], strides = [1, 1, 1]} : vector<2x8x192xf32> to vector<2x8x16xf32>
    "tpu.trace_start"() <{level = 10 : i32, message = "bqd,bkd->bqk"}> : () -> ()
    %cst_14 = arith.constant dense<0.000000e+00> : vector<2x8x8xf32>
    %41 = tpu.matmul %38, %39, %cst_14 {dimension_numbers = #tpu.dot_dimension_numbers<[2], [2], [1], [1], [0, 0, 0, 1, 1, 1], [0], [0]>} : vector<2x8x16xf32>, vector<2x8x16xf32>, vector<2x8x8xf32> -> vector<2x8x8xf32>
    "tpu.trace_stop"() : () -> ()
    %cst_15 = arith.constant dense<0xFF800000> : vector<2x8xf32>
    %42 = vector.multi_reduction <maximumf>, %41, %cst_15 [2] : vector<2x8x8xf32> to vector<2x8xf32>
    %43 = vector.shape_cast %42 : vector<2x8xf32> to vector<2x8x1xf32>
    %44 = vector.broadcast %43 : vector<2x8x1xf32> to vector<2x8x8xf32>
    %45 = arith.subf %41, %44 : vector<2x8x8xf32>
    %46 = math.exp %45 : vector<2x8x8xf32>
    %cst_16 = arith.constant dense<0.000000e+00> : vector<2x8xf32>
    %47 = vector.multi_reduction <add>, %46, %cst_16 [2] : vector<2x8x8xf32> to vector<2x8xf32>
    %48 = vector.shape_cast %47 : vector<2x8xf32> to vector<2x8x1xf32>
    %49 = tpu.reciprocal %48 {approx = true} : vector<2x8x1xf32> -> vector<2x8x1xf32>
    %50 = vector.broadcast %49 : vector<2x8x1xf32> to vector<2x8x8xf32>
    %51 = arith.mulf %46, %50 : vector<2x8x8xf32>
    "tpu.trace_start"() <{level = 10 : i32, message = "bqk,bkd->bqd"}> : () -> ()
    %cst_17 = arith.constant dense<0.000000e+00> : vector<2x8x16xf32>
    %52 = tpu.matmul %51, %40, %cst_17 {dimension_numbers = #tpu.dot_dimension_numbers<[2], [1], [1], [2], [0, 0, 0, 1, 1, 2], [0], [0]>} : vector<2x8x8xf32>, vector<2x8x16xf32>, vector<2x8x16xf32> -> vector<2x8x16xf32>
    "tpu.trace_stop"() : () -> ()
    %53 = vector.extract_strided_slice %7 {offsets = [0, 0, 48], sizes = [2, 8, 16], strides = [1, 1, 1]} : vector<2x8x192xf32> to vector<2x8x16xf32>
    %54 = vector.extract_strided_slice %7 {offsets = [0, 0, 112], sizes = [2, 8, 16], strides = [1, 1, 1]} : vector<2x8x192xf32> to vector<2x8x16xf32>
    %55 = vector.extract_strided_slice %7 {offsets = [0, 0, 176], sizes = [2, 8, 16], strides = [1, 1, 1]} : vector<2x8x192xf32> to vector<2x8x16xf32>
    "tpu.trace_start"() <{level = 10 : i32, message = "bqd,bkd->bqk"}> : () -> ()
    %cst_18 = arith.constant dense<0.000000e+00> : vector<2x8x8xf32>
    %56 = tpu.matmul %53, %54, %cst_18 {dimension_numbers = #tpu.dot_dimension_numbers<[2], [2], [1], [1], [0, 0, 0, 1, 1, 1], [0], [0]>} : vector<2x8x16xf32>, vector<2x8x16xf32>, vector<2x8x8xf32> -> vector<2x8x8xf32>
    "tpu.trace_stop"() : () -> ()
    %cst_19 = arith.constant dense<0xFF800000> : vector<2x8xf32>
    %57 = vector.multi_reduction <maximumf>, %56, %cst_19 [2] : vector<2x8x8xf32> to vector<2x8xf32>
    %58 = vector.shape_cast %57 : vector<2x8xf32> to vector<2x8x1xf32>
    %59 = vector.broadcast %58 : vector<2x8x1xf32> to vector<2x8x8xf32>
    %60 = arith.subf %56, %59 : vector<2x8x8xf32>
    %61 = math.exp %60 : vector<2x8x8xf32>
    %cst_20 = arith.constant dense<0.000000e+00> : vector<2x8xf32>
    %62 = vector.multi_reduction <add>, %61, %cst_20 [2] : vector<2x8x8xf32> to vector<2x8xf32>
    %63 = vector.shape_cast %62 : vector<2x8xf32> to vector<2x8x1xf32>
    %64 = tpu.reciprocal %63 {approx = true} : vector<2x8x1xf32> -> vector<2x8x1xf32>
    %65 = vector.broadcast %64 : vector<2x8x1xf32> to vector<2x8x8xf32>
    %66 = arith.mulf %61, %65 : vector<2x8x8xf32>
    "tpu.trace_start"() <{level = 10 : i32, message = "bqk,bkd->bqd"}> : () -> ()
    %cst_21 = arith.constant dense<0.000000e+00> : vector<2x8x16xf32>
    %67 = tpu.matmul %66, %55, %cst_21 {dimension_numbers = #tpu.dot_dimension_numbers<[2], [1], [1], [2], [0, 0, 0, 1, 1, 2], [0], [0]>} : vector<2x8x8xf32>, vector<2x8x16xf32>, vector<2x8x16xf32> -> vector<2x8x16xf32>
    "tpu.trace_stop"() : () -> ()
    %68 = tpu.concatenate %22, %37, %52, %67 in 2 : vector<2x8x16xf32>, vector<2x8x16xf32>, vector<2x8x16xf32>, vector<2x8x16xf32> -> vector<2x8x64xf32>
    %69 = vector.shape_cast %68 : vector<2x8x64xf32> to vector<16x64xf32>
    %c0_22 = arith.constant 0 : index
    %c0_23 = arith.constant 0 : index
    %70 = vector.load %arg4[%c0_22, %c0_23] : memref<64x64xf32, #tpu.memory_space<vmem>>, vector<64x64xf32>
    %cst_24 = arith.constant dense<0.000000e+00> : vector<16x64xf32>
    %71 = tpu.matmul %69, %70, %cst_24 {dimension_numbers = #tpu.dot_dimension_numbers<[1], [0], [0], [1], [0, 0, 1, 1], [], []>} : vector<16x64xf32>, vector<64x64xf32>, vector<16x64xf32> -> vector<16x64xf32>
    %c0_25 = arith.constant 0 : index
    %c0_26 = arith.constant 0 : index
    %72 = vector.load %arg5[%c0_25, %c0_26] : memref<1x64xf32, #tpu.memory_space<vmem>>, vector<1x64xf32>
    %73 = vector.broadcast %72 : vector<1x64xf32> to vector<16x64xf32>
    %74 = arith.addf %71, %73 : vector<16x64xf32>
    %75 = arith.addf %1, %74 : vector<16x64xf32>
    %c0_27 = arith.constant 0 : index
    %c0_28 = arith.constant 0 : index
    %76 = vector.load %arg6[%c0_27, %c0_28] : memref<1x64xf32, #tpu.memory_space<vmem>>, vector<1x64xf32>
    %c0_29 = arith.constant 0 : index
    %c0_30 = arith.constant 0 : index
    %77 = vector.load %arg7[%c0_29, %c0_30] : memref<1x64xf32, #tpu.memory_space<vmem>>, vector<1x64xf32>
    %cst_31 = arith.constant dense<0.000000e+00> : vector<16xf32>
    %78 = vector.multi_reduction <add>, %75, %cst_31 [1] : vector<16x64xf32> to vector<16xf32>
    %79 = vector.shape_cast %78 : vector<16xf32> to vector<16x1xf32>
    %cst_32 = arith.constant 6.400000e+01 : f32
    %80 = vector.broadcast %cst_32 : f32 to vector<16x1xf32>
    %81 = arith.divf %79, %80 : vector<16x1xf32>
    %82 = vector.broadcast %81 : vector<16x1xf32> to vector<16x64xf32>
    %83 = arith.subf %75, %82 : vector<16x64xf32>
    %84 = arith.mulf %83, %83 : vector<16x64xf32>
    %cst_33 = arith.constant dense<0.000000e+00> : vector<16xf32>
    %85 = vector.multi_reduction <add>, %84, %cst_33 [1] : vector<16x64xf32> to vector<16xf32>
    %86 = vector.shape_cast %85 : vector<16xf32> to vector<16x1xf32>
    %cst_34 = arith.constant 6.400000e+01 : f32
    %87 = vector.broadcast %cst_34 : f32 to vector<16x1xf32>
    %88 = arith.divf %86, %87 : vector<16x1xf32>
    %89 = vector.broadcast %81 : vector<16x1xf32> to vector<16x64xf32>
    %90 = arith.subf %75, %89 : vector<16x64xf32>
    %cst_35 = arith.constant 9.99999974E-6 : f32
    %91 = vector.broadcast %cst_35 : f32 to vector<16x1xf32>
    %92 = arith.addf %88, %91 : vector<16x1xf32>
    %93 = math.rsqrt %92 : vector<16x1xf32>
    %94 = vector.broadcast %93 : vector<16x1xf32> to vector<16x64xf32>
    %95 = arith.mulf %90, %94 : vector<16x64xf32>
    %96 = vector.broadcast %76 : vector<1x64xf32> to vector<16x64xf32>
    %97 = arith.mulf %95, %96 : vector<16x64xf32>
    %98 = vector.broadcast %77 : vector<1x64xf32> to vector<16x64xf32>
    %99 = arith.addf %97, %98 : vector<16x64xf32>
    %c0_36 = arith.constant 0 : index
    %c0_37 = arith.constant 0 : index
    %100 = vector.load %arg8[%c0_36, %c0_37] : memref<64x256xf32, #tpu.memory_space<vmem>>, vector<64x256xf32>
    %cst_38 = arith.constant dense<0.000000e+00> : vector<16x256xf32>
    %101 = tpu.matmul %99, %100, %cst_38 {dimension_numbers = #tpu.dot_dimension_numbers<[1], [0], [0], [1], [0, 0, 1, 1], [], []>} : vector<16x64xf32>, vector<64x256xf32>, vector<16x256xf32> -> vector<16x256xf32>
    %c0_39 = arith.constant 0 : index
    %c0_40 = arith.constant 0 : index
    %102 = vector.load %arg9[%c0_39, %c0_40] : memref<1x256xf32, #tpu.memory_space<vmem>>, vector<1x256xf32>
    %103 = vector.broadcast %102 : vector<1x256xf32> to vector<16x256xf32>
    %104 = arith.addf %101, %103 : vector<16x256xf32>
    %cst_41 = arith.constant 0.000000e+00 : f32
    %105 = vector.broadcast %cst_41 : f32 to vector<16x256xf32>
    %106 = arith.maximumf %104, %105 : vector<16x256xf32>
    %c0_42 = arith.constant 0 : index
    %c0_43 = arith.constant 0 : index
    %107 = vector.load %arg10[%c0_42, %c0_43] : memref<256x64xf32, #tpu.memory_space<vmem>>, vector<256x64xf32>
    %cst_44 = arith.constant dense<0.000000e+00> : vector<16x64xf32>
    %108 = tpu.matmul %106, %107, %cst_44 {dimension_numbers = #tpu.dot_dimension_numbers<[1], [0], [0], [1], [0, 0, 1, 1], [], []>} : vector<16x256xf32>, vector<256x64xf32>, vector<16x64xf32> -> vector<16x64xf32>
    %c0_45 = arith.constant 0 : index
    %c0_46 = arith.constant 0 : index
    %109 = vector.load %arg11[%c0_45, %c0_46] : memref<1x64xf32, #tpu.memory_space<vmem>>, vector<1x64xf32>
    %110 = vector.broadcast %109 : vector<1x64xf32> to vector<16x64xf32>
    %111 = arith.addf %108, %110 : vector<16x64xf32>
    %112 = arith.addf %99, %111 : vector<16x64xf32>
    %c0_47 = arith.constant 0 : index
    %c0_48 = arith.constant 0 : index
    %113 = vector.load %arg12[%c0_47, %c0_48] : memref<1x64xf32, #tpu.memory_space<vmem>>, vector<1x64xf32>
    %c0_49 = arith.constant 0 : index
    %c0_50 = arith.constant 0 : index
    %114 = vector.load %arg13[%c0_49, %c0_50] : memref<1x64xf32, #tpu.memory_space<vmem>>, vector<1x64xf32>
    %cst_51 = arith.constant dense<0.000000e+00> : vector<16xf32>
    %115 = vector.multi_reduction <add>, %112, %cst_51 [1] : vector<16x64xf32> to vector<16xf32>
    %116 = vector.shape_cast %115 : vector<16xf32> to vector<16x1xf32>
    %cst_52 = arith.constant 6.400000e+01 : f32
    %117 = vector.broadcast %cst_52 : f32 to vector<16x1xf32>
    %118 = arith.divf %116, %117 : vector<16x1xf32>
    %119 = vector.broadcast %118 : vector<16x1xf32> to vector<16x64xf32>
    %120 = arith.subf %112, %119 : vector<16x64xf32>
    %121 = arith.mulf %120, %120 : vector<16x64xf32>
    %cst_53 = arith.constant dense<0.000000e+00> : vector<16xf32>
    %122 = vector.multi_reduction <add>, %121, %cst_53 [1] : vector<16x64xf32> to vector<16xf32>
    %123 = vector.shape_cast %122 : vector<16xf32> to vector<16x1xf32>
    %cst_54 = arith.constant 6.400000e+01 : f32
    %124 = vector.broadcast %cst_54 : f32 to vector<16x1xf32>
    %125 = arith.divf %123, %124 : vector<16x1xf32>
    %126 = vector.broadcast %118 : vector<16x1xf32> to vector<16x64xf32>
    %127 = arith.subf %112, %126 : vector<16x64xf32>
    %cst_55 = arith.constant 9.99999974E-6 : f32
    %128 = vector.broadcast %cst_55 : f32 to vector<16x1xf32>
    %129 = arith.addf %125, %128 : vector<16x1xf32>
    %130 = math.rsqrt %129 : vector<16x1xf32>
    %131 = vector.broadcast %130 : vector<16x1xf32> to vector<16x64xf32>
    %132 = arith.mulf %127, %131 : vector<16x64xf32>
    %133 = vector.broadcast %113 : vector<1x64xf32> to vector<16x64xf32>
    %134 = arith.mulf %132, %133 : vector<16x64xf32>
    %135 = vector.broadcast %114 : vector<1x64xf32> to vector<16x64xf32>
    %136 = arith.addf %134, %135 : vector<16x64xf32>
    %137 = vector.shape_cast %136 : vector<16x64xf32> to vector<2x8x64xf32>
    %c0_56 = arith.constant 0 : index
    %c0_57 = arith.constant 0 : index
    %c0_58 = arith.constant 0 : index
    %138 = vector.load %arg14[%c0_56, %c0_57, %c0_58] : memref<2x8x64xf32, #tpu.memory_space<vmem>>, vector<2x8x64xf32>
    tpu.vector_store %arg14[%c0_56, %c0_57, %c0_58], %137 {strides = array<i32>} : memref<2x8x64xf32, #tpu.memory_space<vmem>>, vector<2x8x64xf32>,
    return
  }
  func.func @transform_0(%arg0: i32) -> (i32, i32, i32) {
    %c0_i32 = arith.constant 0 : i32
    %c0_i32_0 = arith.constant 0 : i32
    %c0_i32_1 = arith.constant 0 : i32
    return %arg0, %c0_i32, %c0_i32_0 : i32, i32, i32
  }
  func.func @transform_1(%arg0: i32) -> (i32, i32) {
    %c0_i32 = arith.constant 0 : i32
    %c0_i32_0 = arith.constant 0 : i32
    %c0_i32_1 = arith.constant 0 : i32
    return %c0_i32, %c0_i32_0 : i32, i32
  }
  func.func @transform_2(%arg0: i32) -> (i32, i32) {
    %c0_i32 = arith.constant 0 : i32
    %c0_i32_0 = arith.constant 0 : i32
    %c0_i32_1 = arith.constant 0 : i32
    return %c0_i32, %c0_i32_0 : i32, i32
  }
  func.func @transform_3(%arg0: i32) -> (i32, i32) {
    %c0_i32 = arith.constant 0 : i32
    %c0_i32_0 = arith.constant 0 : i32
    %c0_i32_1 = arith.constant 0 : i32
    return %c0_i32, %c0_i32_0 : i32, i32
  }
  func.func @transform_4(%arg0: i32) -> (i32, i32) {
    %c0_i32 = arith.constant 0 : i32
    %c0_i32_0 = arith.constant 0 : i32
    %c0_i32_1 = arith.constant 0 : i32
    return %c0_i32, %c0_i32_0 : i32, i32
  }
  func.func @transform_5(%arg0: i32) -> (i32, i32) {
    %c0_i32 = arith.constant 0 : i32
    %c0_i32_0 = arith.constant 0 : i32
    %c0_i32_1 = arith.constant 0 : i32
    return %c0_i32, %c0_i32_0 : i32, i32
  }
  func.func @transform_6(%arg0: i32) -> (i32, i32) {
    %c0_i32 = arith.constant 0 : i32
    %c0_i32_0 = arith.constant 0 : i32
    %c0_i32_1 = arith.constant 0 : i32
    return %c0_i32, %c0_i32_0 : i32, i32
  }
  func.func @transform_7(%arg0: i32) -> (i32, i32) {
    %c0_i32 = arith.constant 0 : i32
    %c0_i32_0 = arith.constant 0 : i32
    %c0_i32_1 = arith.constant 0 : i32
    return %c0_i32, %c0_i32_0 : i32, i32
  }
  func.func @transform_8(%arg0: i32) -> (i32, i32) {
    %c0_i32 = arith.constant 0 : i32
    %c0_i32_0 = arith.constant 0 : i32
    %c0_i32_1 = arith.constant 0 : i32
    return %c0_i32, %c0_i32_0 : i32, i32
  }
  func.func @transform_9(%arg0: i32) -> (i32, i32) {
    %c0_i32 = arith.constant 0 : i32
    %c0_i32_0 = arith.constant 0 : i32
    %c0_i32_1 = arith.constant 0 : i32
    return %c0_i32, %c0_i32_0 : i32, i32
  }
  func.func @transform_10(%arg0: i32) -> (i32, i32) {
    %c0_i32 = arith.constant 0 : i32
    %c0_i32_0 = arith.constant 0 : i32
    %c0_i32_1 = arith.constant 0 : i32
    return %c0_i32, %c0_i32_0 : i32, i32
  }
  func.func @transform_11(%arg0: i32) -> (i32, i32) {
    %c0_i32 = arith.constant 0 : i32
    %c0_i32_0 = arith.constant 0 : i32
    %c0_i32_1 = arith.constant 0 : i32
    return %c0_i32, %c0_i32_0 : i32, i32
  }
  func.func @transform_12(%arg0: i32) -> (i32, i32) {
    %c0_i32 = arith.constant 0 : i32
    %c0_i32_0 = arith.constant 0 : i32
    %c0_i32_1 = arith.constant 0 : i32
    return %c0_i32, %c0_i32_0 : i32, i32
  }
  func.func @transform_13(%arg0: i32) -> (i32, i32, i32) {
    %c0_i32 = arith.constant 0 : i32
    %c0_i32_0 = arith.constant 0 : i32
    %c0_i32_1 = arith.constant 0 : i32
    return %arg0, %c0_i32, %c0_i32_0 : i32, i32, i32
  }
}

</mosaic_0001>

<bundles_post_ra>
// kernel: tpu_custom_call.1
= control target key start
LH: loop header
LB: loop body
LE: loop exit
PB: predicated region body
PF: predicated region fallthrough
CT: control target
= control target key end

     0   :  { %v2232_v4 = vmov 0.0   ;;  %s2771_s0 = inlined_call_operand.vmem [shape: f32[2,8,64], index: 0, kind: input, shape index: {}]   ;;  %s2772_s1 = inlined_call_operand.vmem [shape: f32[64,192], index: 1, kind: input, shape index: {}]   ;;  %s2773_s2 = inlined_call_operand.vmem [shape: f32[1,192], index: 2, kind: input, shape index: {}]   ;;  %s2774_s3 = inlined_call_operand.vmem [shape: f32[64,64], index: 3, kind: input, shape index: {}]   ;;  %s2775_s4 = inlined_call_operand.vmem [shape: f32[1,64], index: 4, kind: input, shape index: {}]   ;;  %s2776_s5 = inlined_call_operand.vmem [shape: f32[1,64], index: 5, kind: input, shape index: {}]   ;;  %s2777_s6 = inlined_call_operand.vmem [shape: f32[1,64], index: 6, kind: input, shape index: {}]   ;;  %s2778_s7 = inlined_call_operand.vmem [shape: f32[64,256], index: 7, kind: input, shape index: {}]   ;;  %s2779_s8 = inlined_call_operand.vmem [shape: f32[1,256], index: 8, kind: input, shape index: {}]   ;;  %s2780_s9 = inlined_call_operand.vmem [shape: f32[256,64], index: 9, kind: input, shape index: {}]   ;;  %s2781_s10 = inlined_call_operand.vmem [shape: f32[1,64], index: 10, kind: input, shape index: {}]   ;;  %s2782_s11 = inlined_call_operand.vmem [shape: f32[1,64], index: 11, kind: input, shape index: {}]   ;;  %s2783_s12 = inlined_call_operand.vmem [shape: f32[1,64], index: 12, kind: input, shape index: {}]   ;;  %s2784_s13 = inlined_call_operand.hbm [shape: f32[2,8,64], index: 13, kind: output, shape index: {}]  }
   0x1   :  { %v62_v0 = vld [vmem:[%s2772_s1 + $0x78] sm:$0xff]  ;;  %v61_v1 = vld [vmem:[%s2772_s1 + $0x70] sm:$0xff]  ;;  %v60_v2 = vld [vmem:[%s2772_s1 + $0x68] sm:$0xff]  ;;  %146 = vmatprep.mubr.f32.mxu0 %v2232_v4  ;;  %2059 = vmatprep.subr.mxu1 %v2232_v4 }
   0x2   :  { %98 = vmatprep.subr.mxu0 %v62_v0  ;;  %v59_v3 = vld [vmem:[%s2772_s1 + $0x60] sm:$0xff]  ;;  %v58_v5 = vld [vmem:[%s2772_s1 + $0x58] sm:$0xff]  ;;  %v57_v6 = vld [vmem:[%s2772_s1 + $0x50] sm:$0xff] }
   0x3   :  { %99 = vmatpush1.msra.mxu0 %v61_v1  ;;  %v56_v7 = vld [vmem:[%s2772_s1 + $0x48] sm:$0xff]  ;;  %v55_v8 = vld [vmem:[%s2772_s1 + $0x40] sm:$0xff]  ;;  %v54_v9 = vld [vmem:[%s2772_s1 + $0x38] sm:$0xff] }
   0x4   :  { %100 = vmatprep.subr.mxu0 %v60_v2 }
   0x5   :  { %101 = vmatpush1.msra.mxu0 %v59_v3 }
   0x6   :  { %102 = vmatprep.subr.mxu0 %v58_v5 }
   0x7   :  { %103 = vmatpush1.msra.mxu0 %v57_v6 }
   0x8   :  { %18 = vsyncpa [#allocation3], 0  ;;  %104 = vmatprep.subr.mxu0 %v56_v7  ;;  %v53_v10 = vld [vmem:[%s2772_s1 + $0x30] sm:$0xff]  ;;  %v52_v11 = vld [vmem:[%s2772_s1 + $0x28] sm:$0xff]  ;;  %vm75_vm0 = vcmask 523264   ;;  %v65_v19 = vlaneseq  ;;  %vm2233_vm1 = vmmov 0  }
   0x9   :  { %105 = vmatpush1.msra.mxu0 %v55_v8  ;;  %v51_v12 = vld [vmem:[%s2772_s1 + $0x20] sm:$0xff]  ;;  %v50_v13 = vld [vmem:[%s2772_s1 + $0x18] sm:$0xff]  ;;  %v49_v14 = vld [vmem:[%s2772_s1 + $0x10] sm:$0xff]  ;;  %2061 = vmatprep.mubr.msk.f32.mxu1 %vm2233_vm1, %v2232_v4  ;;  %vm162_vm2 = vcmask 130048   ;;  %vm314_vm3 = vcmask 64512   ;;  %s2236_s28 = smov 112  }
   0xa   :  { %106 = vmatprep.subr.mxu0 %v54_v9  ;;  %v48_v15 = vld [vmem:[%s2772_s1 + $0x8] sm:$0xff]  ;;  %v47_v16 = vld [vmem:[%s2772_s1] sm:$0xff]  ;;  %v2380_v20 = vshrl.u32 %v65_v19, 7  ;;  %s2237_s29 = smov 32   ;;  %s2238_s30 = smov 96   ;;  %vm1501_vm4 = vcmask 261120  }
   0xb   :  { %107 = vmatpush1.msra.mxu0 %v53_v10  ;;  %v2367_v17 = vld [vmem:[%s2771_s0] sm:$0xff]  ;;  %v2376_v18 = vld [vmem:[%s2771_s0 + $0x8] sm:$0xff]  ;;  %s2234_s0 = smov 64   ;;  %s2239_s14 = smov 16   ;;  %vm1504_vm5 = vcmask 392192  }
   0xc   :  { %108 = vmatprep.subr.mxu0 %v52_v11  ;;  %v67_v21 = vsub.s32 0, %v2380_v20  ;;  %v63_v22 = vld [vmem:[%s2773_s2] sm:$0x3]  ;;  %v71_v29 = vsub.s32 1, %v2380_v20  ;;  %s2235_s2 = smov 48   ;;  %s2240_s15 = smov 80  }
   0xd   :  { %109 = vmatpush1.msra.mxu0 %v51_v12  ;;  %v1976_v20 = vld [vmem:[%s2781_s10] ss:$0 sm:$0xff]  ;;  %s2241_s24 = smov [#allocation2]  }
   0xe   :  { %110 = vmatprep.subr.mxu0 %v50_v13  ;;  %v68_v23 = vrot.slane %v63_v22, %v67_v21  ;;  %v72_v31 = vrot.slane %v63_v22, %v71_v29  ;;  %s1932_s25 = sshll.u32 %s2241_s24, 4  ;;  %s1933_s25 = int_to_ptr.vmem [resolvable:$true] %s1932_s25 }
   0xf   :  { %111 = vmatpush1.msra.mxu0 %v49_v14  ;;  %s2210_s26 = scalar_lea.vmem %s1933_s25, 256  ;;  %p2215_p1 = scmp.lt.s32.totalorder %s1933_s25, %s1933_s25 }
  0x10   :  { %112 = vmatprep.subr.mxu0 %v48_v15  ;;  %p2211_p0 = scmp.ne.s32.totalorder %s1933_s25, %s2210_s26  ;;  %p2216_p2 = scmp.lt.s32.totalorder %s2210_s26, %s2210_s26 }
  0x11   :  { %113 = vmatpush1.msra.mxu0 %v47_v16 }
  0x12   :  { %1943 = vmatmul.mubr.msk.f32.vlgmr.msra.gmra.mxu0 %vm75_vm0, %v2367_v17  ;;  %2084 = vmatprep.subr.mxu0 %v2232_v4  ;;  %p2217_p3 = por %p2216_p2, %p2215_p1 }
  0x13   :  { %152 = vmatprep.mubr.f32.mxu0 %v2232_v4 }
  0x14   :  { %p2218_p4 = pnand %p2217_p3, %p2211_p0 }
  0x16   :  { %1944 = vmatmul.mubr.msk.f32.gmra.mxu0 %vm75_vm0, %v2376_v18 }
  0x17   :  { %2086 = vmatprep.mubr.msk.f32.mxu0 %vm2233_vm1, %v2232_v4 }
  0xd2   :  { %v148_v24 = vpop.f32.mrf.mxu0 }
  0xd3   :  { %v2392_v25 = vadd.f32 %v148_v24, %v68_v23 }
  0xd4   :  { %v150_v26 = vpop.f32.mrf.mxu0 }
  0xd5   :  { %160 = vrot.lane.b32.xlu0 %v2392_v25, %s2234_s0  ;;  %v2409_v33 = vadd.f32 %v150_v26, %v72_v31 }
  0xd6   :  { %v154_v27 = vpop.f32.mrf.mxu0 }
  0xd7   :  { %v2395_v28 = vadd.f32 %v154_v27, %v68_v23 }
  0xd8   :  { %v156_v56 = vpop.f32.mrf.mxu0 }
  0xd9   :  { %238 = vrot.lane.b32.xlu0 %v2395_v28, %s2234_s0  ;;  %v2434_v59 = vadd.f32 %v156_v56, %v72_v31 }
 0x147   :  { %v161_v30 = vpop.permute.xlu0 %160 }
 0x148   :  { %2060 = vmatpush3.xpose.msk.msra.mxu1 %vm162_vm2, %v161_v30 }
 0x149   :  { %2064 = vmatprep.subr.mxu1 %v2232_v4 }
 0x14b   :  { %2062 = vmatmul.mubr.msk.f32.vlgmr.msra.gmra.mxu1 %vm162_vm2, %v2392_v25  ;;  %v239_v32 = vpop.permute.xlu0 %238 }
 0x14c   :  { %2065 = vmatpush3.xpose.msk.msra.mxu1 %vm162_vm2, %v239_v32  ;;  %2066 = vmatprep.mubr.msk.f32.mxu1 %vm2233_vm1, %v2232_v4 }
 0x14d   :  { %2069 = vmatprep.subr.mxu1 %v2232_v4 }
 0x14f   :  { %2067 = vmatmul.mubr.msk.f32.vlgmr.msra.gmra.mxu1 %vm162_vm2, %v2395_v28 }
 0x150   :  { %2070 = vmatpush3.msra.mxu1 %v2409_v33  ;;  %2071 = vmatprep.mubr.msk.f32.mxu1 %vm2233_vm1, %v2232_v4 }
 0x151   :  { %2074 = vmatprep.subr.mxu1 %v2232_v4 }
 0x20b   :  { %v233_v34 = vpop.f32.mrf.mxu1 }
 0x20c   :  { %v315_v35 = vsel %vm314_vm3, %v233_v34, -inf }
 0x20d   :  { %316 = vmax.xlane.f32.xlu1 %v315_v35  ;;  %v2063_v36 = vpop.f32.mrf.mxu1 }
 0x20f   :  { %v310_v37 = vpop.f32.mrf.mxu1 }
 0x210   :  { %v318_v38 = vsel %vm314_vm3, %v310_v37, -inf }
 0x211   :  { %319 = vmax.xlane.f32.xlu1 %v318_v38  ;;  %v2068_v39 = vpop.f32.mrf.mxu1 }
 0x222   :  { %485 = vrot.lane.b32.xlu1 %v2392_v25, %s2235_s2 }
 0x226   :  { %563 = vrot.lane.b32.xlu1 %v2395_v28, %s2235_s2 }
 0x22a   :  { %483 = vrot.lane.b32.xlu1 %v2392_v25, %s2236_s28 }
 0x296   :  { %v317_v40 = vpop.xlane.xlu1 %316 }
 0x297   :  { %v321_v41 = vsub.f32 %v233_v34, %v317_v40 }
 0x299   :  { %v323_v42 = vmul.f32 1.442695, %v321_v41 }
 0x29a   :  { %v320_v43 = vpop.xlane.xlu1 %319 }
 0x29b   :  { %2170 = vpow2.f32 %v323_v42  ;;  %v322_v44 = vsub.f32 %v310_v37, %v320_v43 }
 0x29d   :  { %v325_v45 = vmul.f32 1.442695, %v322_v44 }
 0x29e   :  { %v486_v46 = vpop.permute.xlu1 %485 }
 0x29f   :  { %2172 = vpow2.f32 %v325_v45 }
 0x2a2   :  { %v564_v47 = vpop.permute.xlu1 %563 }
 0x2a3   :  { %2085 = vmatpush3.xpose.msk.msra.mxu0 %vm162_vm2, %v564_v47 }
 0x2a4   :  { %2094 = vmatprep.subr.mxu0 %v2232_v4 }
 0x2a6   :  { %v484_v52 = vpop.permute.xlu1 %483 }
 0x2a8   :  { %v2171_v48 = vpop.eup %2170 }
 0x2a9   :  { %v327_v49 = vsel %vm314_vm3, %v2171_v48, 0.0 }
 0x2aa   :  { %328 = vadd.xlane.f32.xlu0 %v327_v49 }
 0x2ac   :  { %v2173_v50 = vpop.eup %2172 }
 0x2ad   :  { %v330_v51 = vsel %vm314_vm3, %v2173_v50, 0.0 }
 0x2ae   :  { %331 = vadd.xlane.f32.xlu1 %v330_v51 }
 0x2bf   :  { %561 = vrot.lane.b32.xlu1 %v2395_v28, %s2236_s28 }
 0x333   :  { %v329_v53 = vpop.xlane.xlu0 %328 }
 0x334   :  { %2174 = vrcp.f32 %v329_v53 }
 0x337   :  { %v332_v54 = vpop.xlane.xlu1 %331 }
 0x338   :  { %2176 = vrcp.f32 %v332_v54 }
 0x33b   :  { %v562_v55 = vpop.permute.xlu1 %561 }
 0x33c   :  { %2087 = vmatmul.mubr.msk.f32.vlgmr.msra.gmra.mxu0 %vm162_vm2, %v562_v55 }
 0x33d   :  { %2096 = vmatprep.mubr.msk.f32.mxu0 %vm2233_vm1, %v2232_v4 }
 0x341   :  { %v2175_v57 = vpop.eup %2174 }
 0x342   :  { %v335_v58 = vmul.f32 %v2175_v57, %v2171_v48 }
 0x344   :  { %2072 = vmatmul.mubr.msk.f32.vlgmr.msra.gmra.mxu1 %vm314_vm3, %v335_v58 }
 0x345   :  { %v2177_v60 = vpop.eup %2176  ;;  %2075 = vmatpush3.msra.mxu1 %v2434_v59  ;;  %2076 = vmatprep.mubr.msk.f32.mxu1 %vm2233_vm1, %v2232_v4 }
 0x346   :  { %2079 = vmatprep.subr.mxu1 %v2232_v4  ;;  %v336_v61 = vmul.f32 %v2177_v60, %v2173_v50 }
 0x348   :  { %2077 = vmatmul.mubr.msk.f32.vlgmr.msra.gmra.mxu1 %vm314_vm3, %v336_v61 }
 0x349   :  { %2080 = vmatpush3.xpose.msk.msra.mxu1 %vm162_vm2, %v486_v46  ;;  %2081 = vmatprep.mubr.msk.f32.mxu1 %vm2233_vm1, %v2232_v4 }
 0x34a   :  { %2089 = vmatprep.subr.mxu1 %v2232_v4 }
 0x34c   :  { %2082 = vmatmul.mubr.msk.f32.vlgmr.msra.gmra.mxu1 %vm162_vm2, %v484_v52 }
 0x34d   :  { %2091 = vmatprep.mubr.msk.f32.mxu1 %vm2233_vm1, %v2232_v4 }
 0x3fc   :  { %v635_v62 = vpop.f32.mrf.mxu0 }
 0x3fd   :  { %v642_v63 = vsel %vm314_vm3, %v635_v62, -inf }
 0x3fe   :  { %643 = vmax.xlane.f32.xlu1 %v642_v63  ;;  %v2088_v0 = vpop.f32.mrf.mxu0 }
 0x404   :  { %v2450_v1 = vpop.f32.mrf.mxu1 }
 0x406   :  { %v2073_v2 = vpop.f32.mrf.mxu1 }
 0x408   :  { %v2452_v3 = vpop.f32.mrf.mxu1 }
 0x40a   :  { %v2078_v5 = vpop.f32.mrf.mxu1 }
 0x40c   :  { %v557_v6 = vpop.f32.mrf.mxu1 }
 0x40d   :  { %v639_v7 = vsel %vm314_vm3, %v557_v6, -inf }
 0x40e   :  { %640 = vmax.xlane.f32.xlu0 %v639_v7  ;;  %v2083_v8 = vpop.f32.mrf.mxu1 }
 0x40f   :  { %895 = vrot.lane.b32.xlu1 %v2395_v28, %s2237_s29 }
 0x487   :  { %v644_v9 = vpop.xlane.xlu1 %643 }
 0x488   :  { %v646_v10 = vsub.f32 %v635_v62, %v644_v9 }
 0x48a   :  { %v649_v11 = vmul.f32 1.442695, %v646_v10 }
 0x48b   :  { %v896_v31 = vpop.permute.xlu1 %895 }
 0x48c   :  { %2178 = vpow2.f32 %v649_v11 }
 0x497   :  { %v641_v14 = vpop.xlane.xlu0 %640 }
 0x498   :  { %v645_v15 = vsub.f32 %v557_v6, %v641_v14 }
 0x499   :  { %v2179_v12 = vpop.eup %2178 }
 0x49a   :  { %v654_v13 = vsel %vm314_vm3, %v2179_v12, 0.0  ;;  %v647_v16 = vmul.f32 1.442695, %v645_v15 }
 0x49b   :  { %655 = vadd.xlane.f32.xlu0 %v654_v13 }
 0x49c   :  { %2180 = vpow2.f32 %v647_v16 }
 0x4a9   :  { %v2181_v19 = vpop.eup %2180 }
 0x4aa   :  { %v651_v22 = vsel %vm314_vm3, %v2181_v19, 0.0 }
 0x4b1   :  { %662 = vrot.lane.b32.xlu0 %v2409_v33, %s2236_s28 }
 0x4b5   :  { %739 = vrot.lane.b32.xlu0 %v2434_v59, %s2236_s28 }
 0x4b9   :  { %817 = vrot.lane.b32.xlu0 %v2392_v25, %s2237_s29 }
 0x4d8   :  { %652 = vadd.xlane.f32.xlu0 %v651_v22 }
 0x4ee   :  { %815 = vrot.lane.b32.xlu0 %v2392_v25, %s2238_s30 }
 0x4f2   :  { %893 = vrot.lane.b32.xlu0 %v2395_v28, %s2238_s30 }
 0x524   :  { %v656_v23 = vpop.xlane.xlu0 %655 }
 0x525   :  { %2182 = vrcp.f32 %v656_v23 }
 0x528   :  { %v663_v24 = vpop.permute.xlu0 %662 }
 0x529   :  { %2090 = vmatpush3.msra.mxu1 %v663_v24 }
 0x52a   :  { %2099 = vmatprep.subr.mxu1 %v2232_v4 }
 0x52c   :  { %v740_v26 = vpop.permute.xlu0 %739 }
 0x52d   :  { %2095 = vmatpush3.msra.mxu0 %v740_v26 }
 0x52e   :  { %2104 = vmatprep.subr.mxu0 %v2232_v4 }
 0x530   :  { %v818_v32 = vpop.permute.xlu0 %817 }
 0x532   :  { %v2183_v27 = vpop.eup %2182 }
 0x533   :  { %v660_v30 = vmul.f32 %v2183_v27, %v2179_v12 }
 0x535   :  { %2097 = vmatmul.mubr.msk.f32.vlgmr.msra.gmra.mxu0 %vm314_vm3, %v660_v30 }
 0x536   :  { %2105 = vmatpush3.xpose.msk.msra.mxu0 %vm162_vm2, %v896_v31  ;;  %2106 = vmatprep.mubr.msk.f32.mxu0 %vm2233_vm1, %v2232_v4 }
 0x537   :  { %2114 = vmatprep.subr.mxu0 %v2232_v4 }
 0x561   :  { %v653_v34 = vpop.xlane.xlu0 %652 }
 0x562   :  { %2184 = vrcp.f32 %v653_v34 }
 0x565   :  { %v816_v35 = vpop.permute.xlu0 %815 }
 0x569   :  { %v894_v36 = vpop.permute.xlu0 %893 }
 0x56a   :  { %2107 = vmatmul.mubr.msk.f32.vlgmr.msra.gmra.mxu0 %vm162_vm2, %v894_v36 }
 0x56b   :  { %2116 = vmatprep.mubr.msk.f32.mxu0 %vm2233_vm1, %v2232_v4 }
 0x56f   :  { %v2185_v37 = vpop.eup %2184 }
 0x570   :  { %v659_v38 = vmul.f32 %v2185_v37, %v2181_v19 }
 0x572   :  { %2092 = vmatmul.mubr.msk.f32.vlgmr.msra.gmra.mxu1 %vm314_vm3, %v659_v38 }
 0x573   :  { %2100 = vmatpush3.xpose.msk.msra.mxu1 %vm162_vm2, %v818_v32  ;;  %2101 = vmatprep.mubr.msk.f32.mxu1 %vm2233_vm1, %v2232_v4 }
 0x574   :  { %2109 = vmatprep.subr.mxu1 %v2232_v4 }
 0x576   :  { %2102 = vmatmul.mubr.msk.f32.vlgmr.msra.gmra.mxu1 %vm162_vm2, %v816_v35 }
 0x577   :  { %2111 = vmatprep.mubr.msk.f32.mxu1 %vm2233_vm1, %v2232_v4 }
 0x5f5   :  { %v2487_v39 = vpop.f32.mrf.mxu0 }
 0x5f7   :  { %v2098_v40 = vpop.f32.mrf.mxu0 }
 0x62a   :  { %v967_v41 = vpop.f32.mrf.mxu0 }
 0x62b   :  { %v974_v42 = vsel %vm314_vm3, %v967_v41, -inf }
 0x62c   :  { %975 = vmax.xlane.f32.xlu1 %v974_v42  ;;  %v2108_v43 = vpop.f32.mrf.mxu0 }
 0x632   :  { %v2490_v44 = vpop.f32.mrf.mxu1 }
 0x634   :  { %v2093_v45 = vpop.f32.mrf.mxu1 }
 0x635   :  { %v1512_v45 = vld [vmem:[%s2774_s3 + $0x28] sm:$0xff] }
 0x636   :  { %v889_v46 = vpop.f32.mrf.mxu1 }
 0x637   :  { %v971_v47 = vsel %vm314_vm3, %v889_v46, -inf }
 0x638   :  { %972 = vmax.xlane.f32.xlu0 %v971_v47  ;;  %v2103_v48 = vpop.f32.mrf.mxu1  ;;  %v1510_v47 = vld [vmem:[%s2774_s3 + $0x18] sm:$0xff] }
 0x639   :  { %v1509_v48 = vld [vmem:[%s2774_s3 + $0x10] sm:$0xff] }
 0x63d   :  { %1069 = vrot.lane.b32.xlu1 %v2434_v59, %s2238_s30 }
 0x641   :  { %1147 = vrot.lane.b32.xlu1 %v2392_v25, %s2239_s14 }
 0x645   :  { %1145 = vrot.lane.b32.xlu1 %v2392_v25, %s2240_s15 }
 0x6b5   :  { %v976_v49 = vpop.xlane.xlu1 %975 }
 0x6b6   :  { %v978_v50 = vsub.f32 %v967_v41, %v976_v49  ;;  %v1508_v49 = vld [vmem:[%s2774_s3 + $0x8] sm:$0xff] }
 0x6b8   :  { %v981_v51 = vmul.f32 1.442695, %v978_v50 }
 0x6b9   :  { %v1070_v52 = vpop.permute.xlu1 %1069 }
 0x6ba   :  { %2186 = vpow2.f32 %v981_v51  ;;  %2115 = vmatpush3.msra.mxu0 %v1070_v52  ;;  %v1507_v51 = vld [vmem:[%s2774_s3] sm:$0xff] }
 0x6bb   :  { %2124 = vmatprep.subr.mxu0 %v2232_v4 }
 0x6bd   :  { %v1148_v6 = vpop.permute.xlu1 %1147 }
 0x6c1   :  { %v973_v55 = vpop.xlane.xlu0 %972  ;;  %v1146_v8 = vpop.permute.xlu1 %1145 }
 0x6c2   :  { %v977_v56 = vsub.f32 %v889_v46, %v973_v55  ;;  %v1511_v46 = vld [vmem:[%s2774_s3 + $0x20] sm:$0xff] }
 0x6c4   :  { %v979_v57 = vmul.f32 1.442695, %v977_v56 }
 0x6c6   :  { %2188 = vpow2.f32 %v979_v57 }
 0x6c7   :  { %v2187_v53 = vpop.eup %2186 }
 0x6c8   :  { %v986_v54 = vsel %vm314_vm3, %v2187_v53, 0.0 }
 0x6c9   :  { %987 = vadd.xlane.f32.xlu0 %v986_v54 }
 0x6d3   :  { %v2189_v25 = vpop.eup %2188 }
 0x6d4   :  { %v983_v58 = vsel %vm314_vm3, %v2189_v25, 0.0 }
 0x6df   :  { %993 = vrot.lane.b32.xlu0 %v2409_v33, %s2238_s30 }
 0x6fe   :  { %984 = vadd.xlane.f32.xlu0 %v983_v58 }
 0x714   :  { %1225 = vrot.lane.b32.xlu0 %v2395_v28, %s2239_s14 }
 0x718   :  { %1223 = vrot.lane.b32.xlu0 %v2395_v28, %s2240_s15 }
 0x752   :  { %v988_v60 = vpop.xlane.xlu0 %987 }
 0x753   :  { %2190 = vrcp.f32 %v988_v60 }
 0x756   :  { %v994_v61 = vpop.permute.xlu0 %993 }
 0x757   :  { %2110 = vmatpush3.msra.mxu1 %v994_v61 }
 0x758   :  { %2119 = vmatprep.subr.mxu1 %v2232_v4 }
 0x760   :  { %v2191_v62 = vpop.eup %2190 }
 0x761   :  { %v992_v63 = vmul.f32 %v2191_v62, %v2187_v53 }
 0x763   :  { %2117 = vmatmul.mubr.msk.f32.vlgmr.msra.gmra.mxu0 %vm314_vm3, %v992_v63 }
 0x764   :  { %2126 = vmatprep.mubr.msk.f32.mxu0 %vm2233_vm1, %v2232_v4 }
 0x787   :  { %v985_v0 = vpop.xlane.xlu0 %984 }
 0x788   :  { %2192 = vrcp.f32 %v985_v0 }
 0x78b   :  { %v1226_v2 = vpop.permute.xlu0 %1225 }
 0x78c   :  { %2125 = vmatpush3.xpose.msk.msra.mxu0 %vm162_vm2, %v1226_v2 }
 0x78d   :  { %2134 = vmatprep.subr.mxu0 %v2232_v4 }
 0x78f   :  { %v1224_v28 = vpop.permute.xlu0 %1223 }
 0x790   :  { %2127 = vmatmul.mubr.msk.f32.vlgmr.msra.gmra.mxu0 %vm162_vm2, %v1224_v28 }
 0x791   :  { %2136 = vmatprep.mubr.msk.f32.mxu0 %vm2233_vm1, %v2232_v4 }
 0x795   :  { %v2193_v5 = vpop.eup %2192 }
 0x796   :  { %v991_v7 = vmul.f32 %v2193_v5, %v2189_v25 }
 0x798   :  { %2112 = vmatmul.mubr.msk.f32.vlgmr.msra.gmra.mxu1 %vm314_vm3, %v991_v7 }
 0x799   :  { %2120 = vmatpush3.xpose.msk.msra.mxu1 %vm162_vm2, %v1148_v6  ;;  %2121 = vmatprep.mubr.msk.f32.mxu1 %vm2233_vm1, %v2232_v4 }
 0x79a   :  { %2129 = vmatprep.subr.mxu1 %v2232_v4 }
 0x79c   :  { %2122 = vmatmul.mubr.msk.f32.vlgmr.msra.gmra.mxu1 %vm162_vm2, %v1146_v8 }
 0x79d   :  { %2131 = vmatprep.mubr.msk.f32.mxu1 %vm2233_vm1, %v2232_v4 }
 0x823   :  { %v1141_v9 = vpop.f32.mrf.mxu0 }
 0x825   :  { %v2118_v10 = vpop.f32.mrf.mxu0 }
 0x850   :  { %v1297_v11 = vpop.f32.mrf.mxu0 }
 0x851   :  { %v1304_v12 = vsel %vm314_vm3, %v1297_v11, -inf }
 0x852   :  { %1305 = vmax.xlane.f32.xlu0 %v1304_v12  ;;  %v2128_v13 = vpop.f32.mrf.mxu0 }
 0x858   :  { %v1065_v14 = vpop.f32.mrf.mxu1 }
 0x85a   :  { %v2113_v15 = vpop.f32.mrf.mxu1 }
 0x85c   :  { %v1219_v16 = vpop.f32.mrf.mxu1 }
 0x85d   :  { %v1301_v19 = vsel %vm314_vm3, %v1219_v16, -inf }
 0x85e   :  { %1302 = vmax.xlane.f32.xlu1 %v1301_v19  ;;  %v2123_v22 = vpop.f32.mrf.mxu1 }
 0x8db   :  { %v1306_v23 = vpop.xlane.xlu0 %1305 }
 0x8dc   :  { %v1308_v24 = vsub.f32 %v1297_v11, %v1306_v23 }
 0x8de   :  { %v1311_v26 = vmul.f32 1.442695, %v1308_v24  ;;  %v1665_v24 = vld [vmem:[%s2778_s7 + $0x78] sm:$0xff] }
 0x8e0   :  { %2194 = vpow2.f32 %v1311_v26  ;;  %v1664_v26 = vld [vmem:[%s2778_s7 + $0x70] sm:$0xff] }
 0x8e7   :  { %v1303_v27 = vpop.xlane.xlu1 %1302 }
 0x8e8   :  { %v1307_v30 = vsub.f32 %v1219_v16, %v1303_v27  ;;  %v1663_v27 = vld [vmem:[%s2778_s7 + $0x68] sm:$0xff] }
 0x8ea   :  { %v1309_v31 = vmul.f32 1.442695, %v1307_v30  ;;  %v1662_v30 = vld [vmem:[%s2778_s7 + $0x60] sm:$0xff] }
 0x8ec   :  { %2196 = vpow2.f32 %v1309_v31  ;;  %v1661_v31 = vld [vmem:[%s2778_s7 + $0x58] sm:$0xff] }
 0x8ed   :  { %v2195_v32 = vpop.eup %2194 }
 0x8ee   :  { %v1316_v34 = vsel %vm314_vm3, %v2195_v32, 0.0 }
 0x8ef   :  { %1317 = vadd.xlane.f32.xlu1 %v1316_v34  ;;  %v1659_v34 = vld [vmem:[%s2778_s7 + $0x48] sm:$0xff] }
 0x8f9   :  { %v2197_v35 = vpop.eup %2196 }
 0x8fa   :  { %v1313_v36 = vsel %vm314_vm3, %v2197_v35, 0.0 }
 0x8fb   :  { %1314 = vadd.xlane.f32.xlu0 %v1313_v36  ;;  %v1657_v36 = vld [vmem:[%s2778_s7 + $0x38] sm:$0xff] }
 0x900   :  { %1399 = vrot.lane.b32.xlu1 %v2434_v59, %s2240_s15 }
 0x904   :  { %1477 = vrot.lane.b32.xlu1 %v2490_v44, %s2239_s14 }
 0x908   :  { %1485 = vrot.lane.b32.xlu1 %v1065_v14, %s2237_s29 }
 0x911   :  { %1323 = vrot.lane.b32.xlu0 %v2409_v33, %s2240_s15  ;;  %v1514_v33 = vld [vmem:[%s2774_s3 + $0x38] sm:$0xff] }
 0x915   :  { %1479 = vrot.lane.b32.xlu0 %v2487_v39, %s2239_s14  ;;  %v1513_v39 = vld [vmem:[%s2774_s3 + $0x30] sm:$0xff] }
 0x919   :  { %1487 = vrot.lane.b32.xlu0 %v1141_v9, %s2237_s29 }
 0x978   :  { %v1318_v37 = vpop.xlane.xlu1 %1317 }
 0x979   :  { %2198 = vrcp.f32 %v1318_v37  ;;  %v1656_v37 = vld [vmem:[%s2778_s7 + $0x30] sm:$0xff] }
 0x97c   :  { %v1400_v38 = vpop.permute.xlu1 %1399 }
 0x97d   :  { %2135 = vmatpush3.msra.mxu0 %v1400_v38  ;;  %v1655_v38 = vld [vmem:[%s2778_s7 + $0x28] sm:$0xff] }
 0x97e   :  { %2139 = vmatprep.subr.mxu0 %v1514_v33 }
 0x980   :  { %v1478_v56 = vpop.permute.xlu1 %1477 }
 0x981   :  { %v1499_v58 = vsel %vm162_vm2, %v2450_v1, %v1478_v56  ;;  %v1969_v1 = vld [vmem:[%s2775_s4] ss:$0 sm:$0xff] }
 0x982   :  { %v1789_v56 = vld [vmem:[%s2780_s9 + $0xc0] sm:$0xff] }
 0x984   :  { %v1315_v40 = vpop.xlane.xlu0 %1314  ;;  %v1486_v25 = vpop.permute.xlu1 %1485 }
 0x985   :  { %2200 = vrcp.f32 %v1315_v40  ;;  %v1502_v61 = vsel %vm1501_vm4, %v1499_v58, %v1486_v25  ;;  %v1654_v40 = vld [vmem:[%s2778_s7 + $0x20] sm:$0xff]  ;;  %v1788_v25 = vld [vmem:[%s2780_s9 + $0xb8] sm:$0xff] }
 0x986   :  { %v2199_v59 = vpop.eup %2198  ;;  %v1772_v58 = vld [vmem:[%s2780_s9 + $0x38] sm:$0xff] }
 0x987   :  { %v1322_v41 = vmul.f32 %v2199_v59, %v2195_v32  ;;  %v1660_v32 = vld [vmem:[%s2778_s7 + $0x50] sm:$0xff]  ;;  %v1653_v59 = vld [vmem:[%s2778_s7 + $0x18] sm:$0xff] }
 0x988   :  { %v1324_v42 = vpop.permute.xlu0 %1323 }
 0x989   :  { %2130 = vmatpush3.msra.mxu1 %v1324_v42  ;;  %2137 = vmatmul.mubr.msk.f32.vlgmr.msra.gmra.mxu0 %vm314_vm3, %v1322_v41  ;;  %v1652_v41 = vld [vmem:[%s2778_s7 + $0x10] sm:$0xff]  ;;  %v1651_v42 = vld [vmem:[%s2778_s7 + $0x8] sm:$0xff] }
 0x98a   :  { %2140 = vmatpush3.msra.mxu0 %v1514_v33  ;;  %v1780_v33 = vld [vmem:[%s2780_s9 + $0x78] sm:$0xff] }
 0x98b   :  { %2141 = vmatprep.subr.mxu0 %v1513_v39 }
 0x98c   :  { %2142 = vmatpush3.msra.mxu0 %v1513_v39  ;;  %v1480_v55 = vpop.permute.xlu0 %1479  ;;  %v1795_v39 = vld [vmem:[%s2780_s9 + $0xf0] sm:$0xff] }
 0x98d   :  { %2143 = vmatprep.subr.mxu0 %v1512_v45  ;;  %v1500_v62 = vsel %vm162_vm2, %v2452_v3, %v1480_v55  ;;  %v1774_v55 = vld [vmem:[%s2780_s9 + $0x48] sm:$0xff] }
 0x98e   :  { %2144 = vmatpush3.msra.mxu0 %v1512_v45  ;;  %v1779_v45 = vld [vmem:[%s2780_s9 + $0x70] sm:$0xff] }
 0x98f   :  { %2145 = vmatprep.subr.mxu0 %v1511_v46 }
 0x990   :  { %2146 = vmatpush3.msra.mxu0 %v1511_v46  ;;  %v1488_v57 = vpop.permute.xlu0 %1487  ;;  %v1794_v46 = vld [vmem:[%s2780_s9 + $0xe8] sm:$0xff] }
 0x991   :  { %2147 = vmatprep.subr.mxu0 %v1510_v47  ;;  %v1503_v0 = vsel %vm1501_vm4, %v1500_v62, %v1488_v57  ;;  %v1773_v57 = vld [vmem:[%s2780_s9 + $0x40] sm:$0xff]  ;;  %v1786_v62 = vld [vmem:[%s2780_s9 + $0xa8] sm:$0xff] }
 0x992   :  { %v2201_v43 = vpop.eup %2200  ;;  %2148 = vmatpush3.msra.mxu0 %v1510_v47  ;;  %v1778_v47 = vld [vmem:[%s2780_s9 + $0x68] sm:$0xff] }
 0x993   :  { %v1321_v44 = vmul.f32 %v2201_v43, %v2197_v35  ;;  %2149 = vmatprep.subr.mxu0 %v1509_v48  ;;  %v1658_v35 = vld [vmem:[%s2778_s7 + $0x40] sm:$0xff] }
 0x994   :  { %2150 = vmatpush3.msra.mxu0 %v1509_v48  ;;  %v1650_v43 = vld [vmem:[%s2778_s7] sm:$0xff] }
 0x995   :  { %2132 = vmatmul.mubr.msk.f32.vlgmr.msra.gmra.mxu1 %vm314_vm3, %v1321_v44  ;;  %2151 = vmatprep.subr.mxu0 %v1508_v49  ;;  %v1796_v44 = vld [vmem:[%s2780_s9 + $0xf8] sm:$0xff]  ;;  %v1793_v48 = vld [vmem:[%s2780_s9 + $0xe0] sm:$0xff] }
 0x996   :  { %2152 = vmatpush3.msra.mxu0 %v1508_v49  ;;  %2021 = vmatprep.subr.mxu1 %v1796_v44  ;;  %v1777_v49 = vld [vmem:[%s2780_s9 + $0x60] sm:$0xff] }
 0x997   :  { %2153 = vmatprep.subr.mxu0 %v1507_v51  ;;  %2022 = vmatpush3.msra.mxu1 %v1780_v33 }
 0x998   :  { %2154 = vmatpush3.msra.mxu0 %v1507_v51  ;;  %2023 = vmatprep.subr.mxu1 %v1795_v39  ;;  %v1776_v51 = vld [vmem:[%s2780_s9 + $0x58] sm:$0xff] }
 0x999   :  { %1700 = vmatprep.subr.mxu0 %v1665_v24  ;;  %2024 = vmatpush3.msra.mxu1 %v1779_v45  ;;  %v1766_v24 = vld [vmem:[%s2780_s9 + $0x8] sm:$0xff] }
 0x99a   :  { %2025 = vmatprep.subr.mxu1 %v1794_v46 }
 0x99b   :  { %2026 = vmatpush3.msra.mxu1 %v1778_v47 }
 0x99c   :  { %2027 = vmatprep.subr.mxu1 %v1793_v48 }
 0x99d   :  { %2028 = vmatpush3.msra.mxu1 %v1777_v49 }
 0xa49   :  { %v1471_v50 = vpop.f32.mrf.mxu0 }
 0xa4a   :  { %1495 = vrot.lane.b32.xlu0 %v1471_v50, %s2235_s2  ;;  %v1792_v50 = vld [vmem:[%s2780_s9 + $0xd8] sm:$0xff] }
 0xa4b   :  { %v2138_v52 = vpop.f32.mrf.mxu0  ;;  %2029 = vmatprep.subr.mxu1 %v1792_v50 }
 0xa4c   :  { %v1791_v52 = vld [vmem:[%s2780_s9 + $0xd0] sm:$0xff]  ;;  %2030 = vmatpush3.msra.mxu1 %v1776_v51 }
 0xa4d   :  { %2031 = vmatprep.subr.mxu1 %v1791_v52 }
 0xa55   :  { %v1395_v53 = vpop.f32.mrf.mxu1 }
 0xa56   :  { %1493 = vrot.lane.b32.xlu1 %v1395_v53, %s2235_s2  ;;  %v1775_v53 = vld [vmem:[%s2780_s9 + $0x50] sm:$0xff] }
 0xa57   :  { %v2133_v54 = vpop.f32.mrf.mxu1  ;;  %2032 = vmatpush3.msra.mxu1 %v1775_v53 }
 0xa58   :  { %v1790_v54 = vld [vmem:[%s2780_s9 + $0xc8] sm:$0xff] }
 0xa59   :  { %2033 = vmatprep.subr.mxu1 %v1790_v54 }
 0xa5a   :  { %2034 = vmatpush3.msra.mxu1 %v1774_v55 }
 0xa5b   :  { %2035 = vmatprep.subr.mxu1 %v1789_v56 }
 0xa5c   :  { %2036 = vmatpush3.msra.mxu1 %v1773_v57 }
 0xa5d   :  { %2037 = vmatprep.subr.mxu1 %v1788_v25 }
 0xa5e   :  { %2038 = vmatpush3.msra.mxu1 %v1772_v58 }
 0xabc   :  { %v1496_v60 = vpop.permute.xlu0 %1495 }
 0xabd   :  { %v1506_v28 = vsel %vm1504_vm5, %v1503_v0, %v1496_v60  ;;  %v1787_v60 = vld [vmem:[%s2780_s9 + $0xb0] sm:$0xff]  ;;  %v1785_v0 = vld [vmem:[%s2780_s9 + $0xa0] sm:$0xff] }
 0xabe   :  { %2039 = vmatprep.subr.mxu1 %v1787_v60 }
 0xac8   :  { %v1494_v63 = vpop.permute.xlu1 %1493 }
 0xac9   :  { %v1505_v2 = vsel %vm1504_vm5, %v1502_v61, %v1494_v63  ;;  %v1771_v61 = vld [vmem:[%s2780_s9 + $0x30] sm:$0xff]  ;;  %v1770_v63 = vld [vmem:[%s2780_s9 + $0x28] sm:$0xff] }
 0xaca   :  { %2155 = vmatprep.mubr.msk.f32.mxu0 %vm75_vm0, %v1505_v2  ;;  %2040 = vmatpush3.msra.mxu1 %v1771_v61  ;;  %v1769_v2 = vld [vmem:[%s2780_s9 + $0x20] sm:$0xff] }
 0xacb   :  { %2156 = vmatmul.mubr.msk.f32.vlgmr.msra.gmra.mxu0 %vm75_vm0, %v1506_v28  ;;  %2041 = vmatprep.subr.mxu1 %v1786_v62 }
 0xacc   :  { %1748 = vmatprep.mubr.f32.mxu0 %v2232_v4  ;;  %1701 = vmatpush1.msra.mxu0 %v1664_v26  ;;  %v1781_v26 = vld [vmem:[%s2780_s9 + $0x80] sm:$0xff] }
 0xacd   :  { %1702 = vmatprep.subr.mxu0 %v1663_v27  ;;  %2042 = vmatpush3.msra.mxu1 %v1770_v63  ;;  %v1765_v27 = vld [vmem:[%s2780_s9] sm:$0xff] }
 0xace   :  { %1703 = vmatpush1.msra.mxu0 %v1662_v30  ;;  %2043 = vmatprep.subr.mxu1 %v1785_v0  ;;  %v1666_v30 = vld [vmem:[%s2779_s8] sm:$0x3] }
 0xacf   :  { %1704 = vmatprep.subr.mxu0 %v1661_v31  ;;  %2044 = vmatpush3.msra.mxu1 %v1769_v2  ;;  %v1671_v31 = vrot.slane %v1666_v30, %v67_v21 }
 0xad0   :  { %1705 = vmatpush1.msra.mxu0 %v1660_v32  ;;  %v1675_v32 = vrot.slane %v1666_v30, %v71_v29 }
 0xad1   :  { %1706 = vmatprep.subr.mxu0 %v1659_v34 }
 0xad2   :  { %1707 = vmatpush1.msra.mxu0 %v1658_v35 }
 0xad3   :  { %1708 = vmatprep.subr.mxu0 %v1657_v36 }
 0xad4   :  { %1709 = vmatpush1.msra.mxu0 %v1656_v37 }
 0xad5   :  { %1710 = vmatprep.subr.mxu0 %v1655_v38 }
 0xad6   :  { %1711 = vmatpush1.msra.mxu0 %v1654_v40 }
 0xad7   :  { %1712 = vmatprep.subr.mxu0 %v1653_v59 }
 0xad8   :  { %1713 = vmatpush1.msra.mxu0 %v1652_v41 }
 0xad9   :  { %1714 = vmatprep.subr.mxu0 %v1651_v42 }
 0xada   :  { %1715 = vmatpush1.msra.mxu0 %v1650_v43 }
 0xb8b   :  { %v2157_v5 = vpop.f32.mrf.mxu0 }
 0xb8c   :  { %v1600_v6 = vadd.f32 %v2157_v5, %v1969_v1 }
 0xb8d   :  { %v1594_v7 = vpop.f32.mrf.mxu0 }
 0xb8e   :  { %v1595_v8 = vadd.f32 %v1969_v1, %v1594_v7  ;;  %v1604_v3 = vadd.f32 %v1600_v6, %v2376_v18 }
 0xb90   :  { %v1610_v9 = vsel %vm75_vm0, %v1604_v3, 0.0  ;;  %v1603_v10 = vadd.f32 %v1595_v8, %v2367_v17 }
 0xb91   :  { %1611 = vadd.xlane.f32.xlu0 %v1610_v9 }
 0xb92   :  { %v1607_v11 = vsel %vm75_vm0, %v1603_v10, 0.0 }
 0xb93   :  { %1608 = vadd.xlane.f32.xlu1 %v1607_v11 }
 0xc1a   :  { %v1612_v12 = vpop.xlane.xlu0 %1611 }
 0xc1b   :  { %v1615_v13 = vmul.f32 0.015625, %v1612_v12  ;;  %v1972_v12 = vld [vmem:[%s2776_s5] ss:$0 sm:$0xff] }
 0xc1c   :  { %v1609_v14 = vpop.xlane.xlu1 %1608 }
 0xc1d   :  { %v2581_v15 = vsub.f32 %v1604_v3, %v1615_v13  ;;  %v1614_v16 = vmul.f32 0.015625, %v1609_v14  ;;  %v1973_v14 = vld [vmem:[%s2777_s6] ss:$0 sm:$0xff] }
 0xc1f   :  { %v2583_v19 = vsub.f32 %v1603_v10, %v1614_v16  ;;  %v1619_v22 = vmul.f32 %v2581_v15, %v2581_v15 }
 0xc21   :  { %v1623_v18 = vsel %vm75_vm0, %v1619_v22, 0.0  ;;  %v1618_v17 = vmul.f32 %v2583_v19, %v2583_v19 }
 0xc22   :  { %1624 = vadd.xlane.f32.xlu1 %v1623_v18 }
 0xc23   :  { %v1620_v23 = vsel %vm75_vm0, %v1618_v17, 0.0  ;;  %v1783_v17 = vld [vmem:[%s2780_s9 + $0x90] sm:$0xff] }
 0xc24   :  { %1621 = vadd.xlane.f32.xlu0 %v1620_v23  ;;  %v1782_v23 = vld [vmem:[%s2780_s9 + $0x88] sm:$0xff] }
 0xcab   :  { %v1625_v28 = vpop.xlane.xlu1 %1624 }
 0xcac   :  { %v1627_v1 = vmul.f32 0.015625, %v1625_v28 }
 0xcad   :  { %v1622_v5 = vpop.xlane.xlu0 %1621 }
 0xcae   :  { %v1629_v6 = vadd.f32 1e-05, %v1627_v1  ;;  %v1626_v7 = vmul.f32 0.015625, %v1622_v5 }
 0xcb0   :  { %2202 = vrsqrt.f32 %v1629_v6  ;;  %v1628_v8 = vadd.f32 1e-05, %v1626_v7 }
 0xcb2   :  { %2204 = vrsqrt.f32 %v1628_v8  ;;  %v1977_v8 = vld [vmem:[%s2782_s11] ss:$0 sm:$0xff] }
 0xcbd   :  { %v2203_v3 = vpop.eup %2202 }
 0xcbe   :  { %v1633_v11 = vmul.f32 %v2203_v3, %v2581_v15  ;;  %v1784_v15 = vld [vmem:[%s2780_s9 + $0x98] sm:$0xff] }
 0xcbf   :  { %v2205_v9 = vpop.eup %2204  ;;  %2045 = vmatprep.subr.mxu1 %v1784_v15 }
 0xcc0   :  { %v1632_v10 = vmul.f32 %v2205_v9, %v2583_v19  ;;  %v1641_v22 = vmul.f32 %v1972_v12, %v1633_v11  ;;  %v1768_v19 = vld [vmem:[%s2780_s9 + $0x18] sm:$0xff]  ;;  %v1978_v9 = vld [vmem:[%s2783_s12] ss:$0 sm:$0xff] }
 0xcc1   :  { %2046 = vmatpush3.msra.mxu1 %v1768_v19 }
 0xcc2   :  { %v1640_v13 = vmul.f32 %v1972_v12, %v1632_v10  ;;  %v1649_v18 = vadd.f32 %v1973_v14, %v1641_v22  ;;  %2047 = vmatprep.subr.mxu1 %v1783_v17 }
 0xcc4   :  { %v1648_v16 = vadd.f32 %v1973_v14, %v1640_v13 }
 0xcc6   :  { %1974 = vmatmul.mubr.msk.f32.vlgmr.msra.gmra.mxu0 %vm75_vm0, %v1648_v16 }
 0xcc7   :  { %1754 = vmatprep.mubr.f32.mxu0 %v2232_v4  ;;  %v1767_v4 = vld [vmem:[%s2780_s9 + $0x10] sm:$0xff] }
 0xcc8   :  { %2048 = vmatpush3.msra.mxu1 %v1767_v4 }
 0xcc9   :  { %2049 = vmatprep.subr.mxu1 %v1782_v23 }
 0xcca   :  { %1975 = vmatmul.mubr.msk.f32.gmra.mxu0 %vm75_vm0, %v1649_v18  ;;  %2050 = vmatpush3.msra.mxu1 %v1766_v24 }
 0xccb   :  { %2051 = vmatprep.subr.mxu1 %v1781_v26 }
 0xccc   :  { %2052 = vmatpush3.msra.mxu1 %v1765_v27 }
 0xd86   :  { %v1750_v34 = vpop.f32.mrf.mxu0 }
 0xd87   :  { %v1751_v35 = vadd.f32 %v1750_v34, %v1671_v31 }
 0xd88   :  { %v1752_v36 = vpop.f32.mrf.mxu0 }
 0xd89   :  { %v1753_v37 = vadd.f32 %v1752_v36, %v1675_v32  ;;  %v1761_v59 = vmax.f32 %v1751_v35, 0.0 }
 0xd8a   :  { %v1756_v38 = vpop.f32.mrf.mxu0 }
 0xd8b   :  { %v1762_v40 = vmax.f32 %v1753_v37, 0.0  ;;  %v1757_v41 = vadd.f32 %v1756_v38, %v1671_v31 }
 0xd8c   :  { %v1758_v42 = vpop.f32.mrf.mxu0 }
 0xd8d   :  { %v1759_v43 = vadd.f32 %v1758_v42, %v1675_v32  ;;  %1868 = vmatprep.mubr.f32.mxu1 %v1762_v40  ;;  %v1763_v33 = vmax.f32 %v1757_v41, 0.0 }
 0xd8e   :  { %1869 = vmatmul.mubr.f32.vlgmr.msra.gmra.mxu1 %v1761_v59 }
 0xd8f   :  { %v1764_v44 = vmax.f32 %v1759_v43, 0.0 }
 0xd91   :  { %1873 = vmatprep.mubr.f32.mxu1 %v1764_v44 }
 0xd92   :  { %1874 = vmatmul.mubr.f32.gmra.mxu1 %v1763_v33 }
 0xe4e   :  { %v2053_v21 = vpop.f32.mrf.mxu1 }
 0xe50   :  { %v2054_v29 = vpop.f32.mrf.mxu1 }
 0xe51   :  { %v2055_v39 = vadd.f32 %v2054_v29, %v2053_v21 }
 0xe52   :  { %v2056_v45 = vpop.f32.mrf.mxu1 }
 0xe53   :  { %v1871_v46 = vadd.f32 %v2055_v39, %v1976_v20 }
 0xe54   :  { %v2057_v47 = vpop.f32.mrf.mxu1 }
 0xe55   :  { %v2058_v48 = vadd.f32 %v2057_v47, %v2056_v45  ;;  %v1879_v49 = vadd.f32 %v1871_v46, %v1648_v16 }
 0xe57   :  { %v1876_v50 = vadd.f32 %v2058_v48, %v1976_v20  ;;  %v1883_v51 = vsel %vm75_vm0, %v1879_v49, 0.0 }
 0xe58   :  { %1884 = vadd.xlane.f32.xlu0 %v1883_v51 }
 0xe59   :  { %v1880_v52 = vadd.f32 %v1876_v50, %v1649_v18 }
 0xe5b   :  { %v1886_v53 = vsel %vm75_vm0, %v1880_v52, 0.0 }
 0xe5c   :  { %1887 = vadd.xlane.f32.xlu1 %v1886_v53 }
 0xee1   :  { %v1885_v54 = vpop.xlane.xlu0 %1884 }
 0xee2   :  { %v1889_v55 = vmul.f32 0.015625, %v1885_v54 }
 0xee4   :  { %v1891_v56 = vsub.f32 %v1879_v49, %v1889_v55 }
 0xee5   :  { %v1888_v57 = vpop.xlane.xlu1 %1887 }
 0xee6   :  { %v1890_v25 = vmul.f32 0.015625, %v1888_v57  ;;  %v1893_v58 = vmul.f32 %v1891_v56, %v1891_v56 }
 0xee8   :  { %v1892_v60 = vsub.f32 %v1880_v52, %v1890_v25  ;;  %v1895_v61 = vsel %vm75_vm0, %v1893_v58, 0.0 }
 0xee9   :  { %1896 = vadd.xlane.f32.xlu0 %v1895_v61 }
 0xeea   :  { %v1894_v62 = vmul.f32 %v1892_v60, %v1892_v60 }
 0xeec   :  { %v1898_v63 = vsel %vm75_vm0, %v1894_v62, 0.0 }
 0xeed   :  { %1899 = vadd.xlane.f32.xlu1 %v1898_v63 }
 0xf72   :  { %v1897_v0 = vpop.xlane.xlu0 %1896 }
 0xf73   :  { %v1901_v2 = vmul.f32 0.015625, %v1897_v0 }
 0xf75   :  { %v1903_v28 = vadd.f32 1e-05, %v1901_v2 }
 0xf76   :  { %v1900_v1 = vpop.xlane.xlu1 %1899 }
 0xf77   :  { %2206 = vrsqrt.f32 %v1903_v28  ;;  %v1902_v5 = vmul.f32 0.015625, %v1900_v1 }
 0xf79   :  { %v1904_v6 = vadd.f32 1e-05, %v1902_v5 }
 0xf7b   :  { %2208 = vrsqrt.f32 %v1904_v6 }
 0xf84   :  { %v2207_v7 = vpop.eup %2206 }
 0xf85   :  { %v1907_v3 = vmul.f32 %v2207_v7, %v1891_v56 }
 0xf87   :  { %v1915_v10 = vmul.f32 %v1977_v8, %v1907_v3 }
 0xf88   :  { %v2209_v11 = vpop.eup %2208 }
 0xf89   :  { %v1908_v12 = vmul.f32 %v2209_v11, %v1892_v60  ;;  %v1923_v13 = vadd.f32 %v1978_v9, %v1915_v10 }
 0xf8b   :  { %v1916_v14 = vmul.f32 %v1977_v8, %v1908_v12  ;;  %1925 = vst.msk [vmem:[#allocation2] sm:$0xff] %vm75_vm0, %v1923_v13 }
 0xf8d   :  { %v1924_v16 = vadd.f32 %v1978_v9, %v1916_v14 }
 0xf8f   :  { %1926 = vst.msk [vmem:[#allocation2 + $0x8] sm:$0xff] %vm75_vm0, %v1924_v16 }
 0xf90   :  { %2221 = shalt.err (!%p2218_p4)
}
 0xf91   :  { %s2242_s11 = smov 128   ;;  %s2243_s12 = smov 8  }
 0xf92   :  { %1938 = dma.vmem_to_hbm [thread:$0]  %s1933_s25, 256, %s2784_s13, [#allocation3], %s2242_s11, %s2242_s11, %s2243_s12  }
 0xf93   :  { %2230 = dma.done.wait [#allocation3], 256  }
 0xf94   :  { %2231 = vsyncadd [#allocation3], 4294967040 }
 0xf95   :  { %1942 = vsyncpa [#allocation3], 1 }

</bundles_post_ra>
